<compile_context>
chip_gen: v6e
topology: v6e:2x2x1
jax: 0.10.0
libtpu: 0.0.40
codegen_flags: <defaults>
</compile_context>

<pallas_src>
from functools import partial

import jax
import jax.numpy as jnp
from jax.experimental import pallas as pl
from jax.experimental.pallas import tpu as pltpu

HIDDEN = 768            # fixed by the module: nn.Linear(768, num_classes)
NUM_HEADS = 12
HEAD_DIM = HIDDEN // NUM_HEADS
INTERMEDIATE = 3072
VOCAB = 100
NUM_CLASSES = 4

# Above the 16/32 MiB scoped defaults, below v7x's 64 MiB physical VMEM.
VMEM_LIMIT = 48 * 1024 * 1024


def _round_up(x, m):
    return (x + m - 1) // m * m


# --------------------------- tiled linear kernel ----------------------------

def _linear_kernel(x_ref, w_ref, b_ref, o_ref, acc_ref, *, activation):
    k = pl.program_id(2)

    @pl.when(k == 0)
    def _():
        acc_ref[...] = jnp.zeros_like(acc_ref)

    # bf16 operands into the MXU, f32 accumulation.
    acc_ref[...] += jnp.dot(x_ref[...].astype(jnp.bfloat16),
                            w_ref[...].astype(jnp.bfloat16),
                            preferred_element_type=jnp.float32)

    @pl.when(k == pl.num_programs(2) - 1)
    def _():
        y = acc_ref[...] + b_ref[...]          # f32 bias / epilogue
        if activation == "gelu":
            y = jax.nn.gelu(y)                 # fused; EUP/VPU slots are free
        o_ref[...] = y.astype(o_ref.dtype)


def pallas_linear(x, w, b, *, activation=None, tm=256, tn=256, tk=1024):
    """x: [M, K] f32, w: [K, N] (bf16 preferred), b: [N] f32 -> [M, N] f32."""
    M, K = x.shape
    Kw, N = w.shape
    assert Kw == K

    tm_ = min(tm, _round_up(M, 8))
    tn_ = min(tn, _round_up(N, 128))
    tk_ = tk if K % tk == 0 else K             # fall back to untiled K
    Mp, Np = _round_up(M, tm_), _round_up(N, tn_)

    xp = x if Mp == M else jnp.pad(x, ((0, Mp - M), (0, 0)))
    wp = w.astype(jnp.bfloat16)
    bp = b.astype(jnp.float32)
    if Np != N:
        wp = jnp.pad(wp, ((0, 0), (0, Np - N)))
        bp = jnp.pad(bp, (0, Np - N))

    grid = (Mp // tm_, Np // tn_, K // tk_)
    out = pl.pallas_call(
        partial(_linear_kernel, activation=activation),
        out_shape=jax.ShapeDtypeStruct((Mp, Np), jnp.float32),
        grid=grid,
        in_specs=[pl.BlockSpec((tm_, tk_), lambda i, j, k: (i, k)),
                  pl.BlockSpec((tk_, tn_), lambda i, j, k: (k, j)),
                  pl.BlockSpec((1, tn_), lambda i, j, k: (0, j))],
        out_specs=pl.BlockSpec((tm_, tn_), lambda i, j, k: (i, j)),
        scratch_shapes=[pltpu.VMEM((tm_, tn_), jnp.float32)],
        compiler_params=pltpu.CompilerParams(
            dimension_semantics=("parallel", "parallel", "arbitrary"),
            vmem_limit_bytes=VMEM_LIMIT),
    )(xp, wp, bp.reshape(1, Np))

    if Mp != M or Np != N:
        out = out[:M, :N]
    return out


# ----------------------------- attention kernel -----------------------------

def _attn_kernel(q_ref, k_ref, v_ref, m_ref, o_ref):
    # One (batch, head) pair per grid step; scores stay in VMEM/vregs.
    # TODO(synk): for long sequences this should tile S with online softmax
    # (flash-style); at these sizes the full [S, S] score tile fits in vregs.
    q = q_ref[0, 0].astype(jnp.bfloat16)       # [S, D]
    k = k_ref[0, 0].astype(jnp.bfloat16)
    v = v_ref[0, 0].astype(jnp.bfloat16)

    s = jax.lax.dot_general(q, k, (((1,), (1,)), ((), ())),
                            preferred_element_type=jnp.float32)   # [S, S] f32
    s = s * (HEAD_DIM ** -0.5) + m_ref[0]       # additive mask kept in f32
    p = jax.nn.softmax(s, axis=-1)              # f32 softmax
    ctx = jnp.dot(p.astype(jnp.bfloat16), v, preferred_element_type=jnp.float32)
    o_ref[0, 0] = ctx.astype(o_ref.dtype)


def pallas_attention(q, k, v, mask_bias):
    """q,k,v: [B, NH, S, D] f32; mask_bias: [B, 1, S] f32 -> [B, NH, S, D] f32."""
    B, NH, S, D = q.shape
    return pl.pallas_call(
        _attn_kernel,
        out_shape=jax.ShapeDtypeStruct((B, NH, S, D), jnp.float32),
        grid=(B, NH),
        in_specs=[pl.BlockSpec((1, 1, S, D), lambda b, h: (b, h, 0, 0)),
                  pl.BlockSpec((1, 1, S, D), lambda b, h: (b, h, 0, 0)),
                  pl.BlockSpec((1, 1, S, D), lambda b, h: (b, h, 0, 0)),
                  pl.BlockSpec((1, 1, S), lambda b, h: (b, 0, 0))],
        out_specs=pl.BlockSpec((1, 1, S, D), lambda b, h: (b, h, 0, 0)),
        compiler_params=pltpu.CompilerParams(
            dimension_semantics=("parallel", "parallel"),
            vmem_limit_bytes=VMEM_LIMIT),
    )(q, k, v, mask_bias)


# --------------------------- classifier head kernel -------------------------

def _head_kernel(h_ref, w_ref, b_ref, o_ref, pool_ref):
    # Seq-tiled running max (matches torch.max(last_hidden_state, dim=1)[0],
    # i.e. padded positions are NOT excluded), then lane-dense fc matmul.
    s = pl.program_id(0)

    @pl.when(s == 0)
    def _():
        pool_ref[...] = jnp.full_like(pool_ref, -jnp.inf)

    pool_ref[...] = jnp.maximum(pool_ref[...], jnp.max(h_ref[...], axis=1))

    @pl.when(s == pl.num_programs(0) - 1)
    def _():
        o_ref[...] = (jnp.dot(pool_ref[...].astype(jnp.bfloat16),
                              w_ref[...].astype(jnp.bfloat16),
                              preferred_element_type=jnp.float32)
                      + b_ref[...])


def classifier_head(hidden, fc_w, fc_b, *, ts=256):
    """hidden: [B, S, H] f32; fc_w: [H, C]; fc_b: [C] -> logits [B, C] f32."""
    B, S, H = hidden.shape
    C = fc_w.shape[1]
    Cp = _round_up(C, 128)                      # lane-dense output (pad to 128)
    wp = jnp.pad(fc_w.astype(jnp.bfloat16), ((0, 0), (0, Cp - C)))
    bp = jnp.pad(fc_b.astype(jnp.float32), (0, Cp - C)).reshape(1, Cp)
    ts_ = ts if S % ts == 0 else S              # TODO(synk): pad S with -inf for ragged S

    out = pl.pallas_call(
        _head_kernel,
        out_shape=jax.ShapeDtypeStruct((B, Cp), jnp.float32),
        grid=(S // ts_,),
        in_specs=[pl.BlockSpec((B, ts_, H), lambda s: (0, s, 0)),
                  pl.BlockSpec((H, Cp), lambda s: (0, 0)),
                  pl.BlockSpec((1, Cp), lambda s: (0, 0))],
        out_specs=pl.BlockSpec((B, Cp), lambda s: (0, 0)),
        scratch_shapes=[pltpu.VMEM((B, H), jnp.float32)],
        compiler_params=pltpu.CompilerParams(
            dimension_semantics=("arbitrary",),
            vmem_limit_bytes=VMEM_LIMIT),
    )(hidden, wp, bp)
    return out[:, :C]


# ----------------------- synthetic BERT encoder (glue) ----------------------
# TODO(synk): the pretrained 12-layer bert-base-uncased cannot be loaded here;
# a deterministic single-layer transformer encoder stands in for self.bert and
# produces last_hidden_state with the correct [B, S, 768] shape/semantics.

def layer_norm(x, gamma, beta, eps=1e-12):
    # Elementwise math kept in f32 (no bf16 VPU/EUP on v5e).
    mu = jnp.mean(x, axis=-1, keepdims=True)
    var = jnp.var(x, axis=-1, keepdims=True)
    return (x - mu) / jnp.sqrt(var + eps) * gamma + beta


def synthetic_bert_encoder(params, input_ids, attention_mask):
    B, S = input_ids.shape
    x = params['word_emb'][input_ids] + params['pos_emb'][None, :S, :]
    x = layer_norm(x, params['emb_ln_g'], params['emb_ln_b'])

    x2d = x.reshape(B * S, HIDDEN)
    # fused QKV projection: one launch, N = 2304
    qkv = pallas_linear(x2d, params['w_qkv'], params['b_qkv'])
    qkv = qkv.reshape(B, S, 3, NUM_HEADS, HEAD_DIM)
    q = jnp.transpose(qkv[:, :, 0], (0, 2, 1, 3))        # [B, NH, S, D]
    k = jnp.transpose(qkv[:, :, 1], (0, 2, 1, 3))
    v = jnp.transpose(qkv[:, :, 2], (0, 2, 1, 3))

    mask_bias = ((1.0 - attention_mask.astype(jnp.float32)) * -1e9).reshape(B, 1, S)
    ctx = pallas_attention(q, k, v, mask_bias)            # [B, NH, S, D]
    ctx2d = jnp.transpose(ctx, (0, 2, 1, 3)).reshape(B * S, HIDDEN)

    attn_out = pallas_linear(ctx2d, params['wo'], params['bo']).reshape(B, S, HIDDEN)
    # TODO(synk): residual add + LayerNorm could be fused into the wo/ffn2 epilogues.
    x = layer_norm(x + attn_out, params['attn_ln_g'], params['attn_ln_b'])

    h2d = x.reshape(B * S, HIDDEN)
    ff = pallas_linear(h2d, params['w_ffn1'], params['b_ffn1'], activation='gelu')
    ff = pallas_linear(ff, params['w_ffn2'], params['b_ffn2']).reshape(B, S, HIDDEN)
    x = layer_norm(x + ff, params['out_ln_g'], params['out_ln_b'])
    return x                                              # [B, S, H]


def bert_classifier_forward(params, input_ids, attention_mask):
    hidden = synthetic_bert_encoder(params, input_ids, attention_mask)
    # TODO(synk): nn.Dropout(0.1) applied in eval mode -> identity.
    logits = classifier_head(hidden, params['fc_w'], params['fc_b'])
    return hidden, logits


# -------------------------------- param init --------------------------------

def init_params(key):
    ks = jax.random.split(key, 16)
    nrm = lambda k, shape, s=0.02: (s * jax.random.normal(k, shape)).astype(jnp.float32)
    wq = nrm(ks[2], (HIDDEN, HIDDEN))
    wk = nrm(ks[3], (HIDDEN, HIDDEN))
    wv = nrm(ks[4], (HIDDEN, HIDDEN))
    p = {
        'word_emb': nrm(ks[0], (VOCAB, HIDDEN)),
        'pos_emb': nrm(ks[1], (512, HIDDEN)),
        'emb_ln_g': jnp.ones((HIDDEN,), jnp.float32),
        'emb_ln_b': jnp.zeros((HIDDEN,), jnp.float32),
        # fused QKV weight [768, 2304], stored bf16 for the MXU
        'w_qkv': jnp.concatenate([wq, wk, wv], axis=1).astype(jnp.bfloat16),
        'b_qkv': jnp.zeros((3 * HIDDEN,), jnp.float32),
        'wo': nrm(ks[5], (HIDDEN, HIDDEN)).astype(jnp.bfloat16),
        'bo': jnp.zeros((HIDDEN,), jnp.float32),
        'attn_ln_g': jnp.ones((HIDDEN,), jnp.float32),
        'attn_ln_b': jnp.zeros((HIDDEN,), jnp.float32),
        'w_ffn1': nrm(ks[6], (HIDDEN, INTERMEDIATE)).astype(jnp.bfloat16),
        'b_ffn1': jnp.zeros((INTERMEDIATE,), jnp.float32),
        'w_ffn2': nrm(ks[7], (INTERMEDIATE, HIDDEN)).astype(jnp.bfloat16),
        'b_ffn2': jnp.zeros((HIDDEN,), jnp.float32),
        'out_ln_g': jnp.ones((HIDDEN,), jnp.float32),
        'out_ln_b': jnp.zeros((HIDDEN,), jnp.float32),
        'fc_w': nrm(ks[8], (HIDDEN, NUM_CLASSES)),
        'fc_b': jnp.zeros((NUM_CLASSES,), jnp.float32),
    }
    return p


# ----------------------------------- main ------------------------------------

if __name__ == "__main__":
    key = jax.random.PRNGKey(0)
    k_params, k_ids, k_x = jax.random.split(key, 3)

    B, S = 2, 8
    params = init_params(k_params)
    input_ids = jax.random.randint(k_ids, (B, S), 0, VOCAB, dtype=jnp.int32)
    attention_mask = jnp.array([[1, 1, 1, 1, 1, 1, 1, 1],
                                [1, 1, 1, 1, 1, 1, 0, 0]], dtype=jnp.int32)

    # standalone check of the K-tiled, bf16 linear kernel (K = 3072 -> 3 K steps)
    xt = jax.random.normal(k_x, (B * S, INTERMEDIATE), jnp.float32)
    got = pallas_linear(xt, params['w_ffn2'], params['b_ffn2'])
    want = (xt.astype(jnp.bfloat16).astype(jnp.float32)
            @ params['w_ffn2'].astype(jnp.float32) + params['b_ffn2'])
    assert bool(jnp.allclose(got, want, rtol=2e-2, atol=2e-2))

    hidden, logits = bert_classifier_forward(params, input_ids, attention_mask)
    logits = jax.block_until_ready(logits)

    # sanity check of the fused Pallas head against plain JAX
    ref = jnp.max(hidden, axis=1) @ params['fc_w'] + params['fc_b']
    assert logits.shape == (B, NUM_CLASSES)
    assert bool(jnp.all(jnp.isfinite(logits)))
    assert bool(jnp.allclose(logits, ref, rtol=2e-2, atol=2e-2))

    print("KERNEL_OK")
</pallas_src>

<mosaic_0001>
module attributes {stable_mosaic.version = 11 : i64} {
  func.func @_linear_kernel(%arg0: i32, %arg1: i32, %arg2: i32, %arg3: memref<16x1024xf32, #tpu.memory_space<vmem>>, %arg4: memref<1024x256xbf16, #tpu.memory_space<vmem>>, %arg5: memref<1x256xf32, #tpu.memory_space<vmem>>, %arg6: memref<16x256xf32, #tpu.memory_space<vmem>>, %arg7: memref<16x256xf32, #tpu.memory_space<vmem>>) attributes {dimension_semantics = [#tpu.dimension_semantics<parallel>, #tpu.dimension_semantics<parallel>, #tpu.dimension_semantics<arbitrary>], iteration_bounds = array<i64: 1, 3, 3>, scalar_prefetch = 0 : i64, scratch_operands = 1 : i64, tpu.core_type = #tpu.core_type<tc>, window_params = [{transform_indices = @transform_0, window_bounds = array<i64: 16, 1024>}, {transform_indices = @transform_1, window_bounds = array<i64: 1024, 256>}, {transform_indices = @transform_2, window_bounds = array<i64: 1, 256>}, {transform_indices = @transform_3, window_bounds = array<i64: 16, 256>}]} {
    %c0_i32 = arith.constant 0 : i32
    %0 = arith.cmpi eq, %arg2, %c0_i32 : i32
    %1 = arith.extui %0 : i1 to i32
    %c0_i32_0 = arith.constant 0 : i32
    %2 = arith.cmpi ne, %1, %c0_i32_0 : i32
    scf.if %2 {
      %cst_9 = arith.constant 0.000000e+00 : f32
      %13 = vector.broadcast %cst_9 : f32 to vector<16x256xf32>
      %c0_10 = arith.constant 0 : index
      %c0_11 = arith.constant 0 : index
      %14 = vector.load %arg7[%c0_10, %c0_11] : memref<16x256xf32, #tpu.memory_space<vmem>>, vector<16x256xf32>
      tpu.vector_store %arg7[%c0_10, %c0_11], %13 {strides = array<i32>} : memref<16x256xf32, #tpu.memory_space<vmem>>, vector<16x256xf32>,
    } else {
    }
    %c0 = arith.constant 0 : index
    %c0_1 = arith.constant 0 : index
    %3 = vector.load %arg7[%c0, %c0_1] : memref<16x256xf32, #tpu.memory_space<vmem>>, vector<16x256xf32>
    %c0_2 = arith.constant 0 : index
    %c0_3 = arith.constant 0 : index
    %4 = vector.load %arg3[%c0_2, %c0_3] : memref<16x1024xf32, #tpu.memory_space<vmem>>, vector<16x1024xf32>
    %5 = arith.truncf %4 : vector<16x1024xf32> to vector<16x1024xbf16>
    %c0_4 = arith.constant 0 : index
    %c0_5 = arith.constant 0 : index
    %6 = vector.load %arg4[%c0_4, %c0_5] : memref<1024x256xbf16, #tpu.memory_space<vmem>>, vector<1024x256xbf16>
    %cst = arith.constant dense<0.000000e+00> : vector<16x256xf32>
    %7 = tpu.matmul %5, %6, %cst {dimension_numbers = #tpu.dot_dimension_numbers<[1], [0], [0], [1], [0, 0, 1, 1], [], []>} : vector<16x1024xbf16>, vector<1024x256xbf16>, vector<16x256xf32> -> vector<16x256xf32>
    %8 = arith.addf %3, %7 : vector<16x256xf32>
    %c0_6 = arith.constant 0 : index
    %c0_7 = arith.constant 0 : index
    %9 = vector.load %arg7[%c0_6, %c0_7] : memref<16x256xf32, #tpu.memory_space<vmem>>, vector<16x256xf32>
    tpu.vector_store %arg7[%c0_6, %c0_7], %8 {strides = array<i32>} : memref<16x256xf32, #tpu.memory_space<vmem>>, vector<16x256xf32>,
    %c2_i32 = arith.constant 2 : i32
    %10 = arith.cmpi eq, %arg2, %c2_i32 : i32
    %11 = arith.extui %10 : i1 to i32
    %c0_i32_8 = arith.constant 0 : i32
    %12 = arith.cmpi ne, %11, %c0_i32_8 : i32
    scf.if %12 {
      %c0_9 = arith.constant 0 : index
      %c0_10 = arith.constant 0 : index
      %13 = vector.load %arg7[%c0_9, %c0_10] : memref<16x256xf32, #tpu.memory_space<vmem>>, vector<16x256xf32>
      %c0_11 = arith.constant 0 : index
      %c0_12 = arith.constant 0 : index
      %14 = vector.load %arg5[%c0_11, %c0_12] : memref<1x256xf32, #tpu.memory_space<vmem>>, vector<1x256xf32>
      %15 = vector.broadcast %14 : vector<1x256xf32> to vector<16x256xf32>
      %16 = arith.addf %13, %15 : vector<16x256xf32>
      %c0_13 = arith.constant 0 : index
      %c0_14 = arith.constant 0 : index
      %17 = vector.load %arg6[%c0_13, %c0_14] : memref<16x256xf32, #tpu.memory_space<vmem>>, vector<16x256xf32>
      tpu.vector_store %arg6[%c0_13, %c0_14], %16 {strides = array<i32>} : memref<16x256xf32, #tpu.memory_space<vmem>>, vector<16x256xf32>,
    } else {
    }
    return
  }
  func.func @transform_0(%arg0: i32, %arg1: i32, %arg2: i32) -> (i32, i32) {
    %c0_i32 = arith.constant 0 : i32
    return %arg0, %arg2 : i32, i32
  }
  func.func @transform_1(%arg0: i32, %arg1: i32, %arg2: i32) -> (i32, i32) {
    %c0_i32 = arith.constant 0 : i32
    return %arg2, %arg1 : i32, i32
  }
  func.func @transform_2(%arg0: i32, %arg1: i32, %arg2: i32) -> (i32, i32) {
    %c0_i32 = arith.constant 0 : i32
    %c0_i32_0 = arith.constant 0 : i32
    return %c0_i32, %arg1 : i32, i32
  }
  func.func @transform_3(%arg0: i32, %arg1: i32, %arg2: i32) -> (i32, i32) {
    %c0_i32 = arith.constant 0 : i32
    return %arg0, %arg1 : i32, i32
  }
}

</mosaic_0001>

<bundles_post_ra>
// kernel: tpu_custom_call.1
= control target key start
LH: loop header
LB: loop body
LE: loop exit
PB: predicated region body
PF: predicated region fallthrough
CT: control target
= control target key end

     0   :  { %s2744_s0 = inlined_call_operand.hbm [shape: f32[16,3072], index: 0, kind: input, shape index: {}]   ;;  %s2745_s1 = inlined_call_operand.hbm [shape: bf16[3072,768], index: 1, kind: input, shape index: {}]   ;;  %s2746_s2 = inlined_call_operand.hbm [shape: f32[1,768], index: 2, kind: input, shape index: {}]   ;;  %s2747_s3 = inlined_call_operand.hbm [shape: f32[16,768], index: 3, kind: output, shape index: {}]  }
   0x1   :  { %2755 = sst [smem:[#allocation21_spill]] %s2744_s0 }
   0x2   :  { %2756 = sst [smem:[#allocation22_spill]] %s2745_s1 }
   0x3   :  { %2757 = sst [smem:[#allocation23_spill]] %s2746_s2 }
   0x4   :  { %2758 = sst [smem:[#allocation24_spill]] %s2747_s3 }
   0x5   :  { %8 = vsyncpa [#allocation4], 0 }
   0x6   :  { %10 = vsyncpa [#allocation4 + $0x1], 0 }
   0x7   :  { %11 = vsyncpa [#allocation7], 0 }
   0x8   :  { %13 = vsyncpa [#allocation7 + $0x1], 0 }
   0x9   :  { %14 = vsyncpa [#allocation5], 0 }
   0xa   :  { %16 = vsyncpa [#allocation5 + $0x1], 0  ;;  %s2239_s12 = smov 0   ;;  %s2241_s13 = smov 0  }
   0xb   :  { %s2243_s14 = smov 0   ;;  %s2245_s15 = smov 0  }
   0xc   :  { %s2247_s16 = smov 0   ;;  %s2249_s17 = smov 0  }
   0xd   :  { %s2251_s18 = smov 0   ;;  %s2253_s19 = smov 0  }
   0xe   :  { %s2255_s20 = smov 0   ;;  %s2257_s21 = smov 0  }
   0xf   :  { %s2259_s22 = smov 0   ;;  %s2261_s23 = smov 0  }
  0x10   :  { %s2263_s24 = smov 0   ;;  %s2265_s25 = smov 0  }
  0x11 LB: > { %2759 = sst [smem:[#allocation14_spill]] %s2183_s20  ;;  %s34_s26 = sadd.s32 1, %s2195_s23  ;;  %s2203_s25 = sphi %s2265_s25, %s22_s25   ;;  %s2199_s24 = sphi %s2263_s24, %s2807_s24   ;;  %s2195_s23 = sphi %s2261_s23, %s2796_s23   ;;  %s2191_s22 = sphi %s2259_s22, %s2806_s22   ;;  %s2187_s21 = sphi %s2257_s21, %s2795_s21   ;;  %s2183_s20 = sphi %s2255_s20, %s2794_s20   ;;  %s2179_s19 = sphi %s2253_s19, %s2805_s19   ;;  %s2175_s18 = sphi %s2251_s18, %s2804_s18   ;;  %s2171_s17 = sphi %s2249_s17, %s2803_s17   ;;  %s2167_s16 = sphi %s2247_s16, %s2802_s16   ;;  %s2163_s15 = sphi %s2245_s15, %s2801_s15   ;;  %s2159_s14 = sphi %s2243_s14, %s2800_s14   ;;  %s2155_s13 = sphi %s2241_s13, %s2799_s13   ;;  %s2151_s12 = sphi %s2239_s12, %s2798_s12  }
  0x12   : > { %2760 = sst [smem:[#allocation15_spill]] %s2187_s21  ;;  %p2311_p0 = scmp.ge.s32.totalorder %s34_s26, 3 }
  0x13   : > { %2761 = sst [smem:[#allocation16_spill]] %s2191_s22  ;;  %p58_p1 = scmp.eq.s32.totalorder %s2203_s25, 0 }
  0x14   : > { %2762 = sst [smem:[#allocation17_spill]] %s2195_s23  ;;  %p85_p2 = scmp.ne.s32.totalorder %s2171_s17, %s2167_s16 }
  0x15   : > { %s2809_s26 = smov (%p2311_p0, %s34_s26), 0  ;;  %p1651_p6 = scmp.lt.s32.totalorder %s2203_s25, 9 }
  0x16   : > { %2764 = sst [smem:[#allocation18_spill]] %s2809_s26  ;;  %p2325_p3 = por %p85_p2, %p58_p1 }
  0x17   : > { %s2333_s4 = ssub.s32 %s2195_s23, %s2809_s26  ;;  %s193_s5 = sand.u32 1, %s2203_s25  }
  0x18   : > { %p48_p5 = scmp.eq.s32.totalorder %s2333_s4, 0  ;;  %s195_s6 = sand.u32 1, %s2171_s17  }
  0x19   : > { %s1477_s7 = sshll.u32 %s195_s6, 10  ;;  %s1479_s8 = sshll.u32 %s2199_s24, 1 }
  0x1a   : > { %s1628_s9 = smul.u32 768, %s2195_s23  ;;  %s197_s10 = scalar_lea.vmem [#allocation6], %s1477_s7 }
  0x1b   : > { %s207_s11 = sshll.u32 %s197_s10, 4  ;;  %p2345_p7 = pnand %p1651_p6, %p2325_p3  ;;  %s208_s11 = int_to_ptr.vmem [resolvable:$true] %s207_s11 }
  0x1c   : > { %s204_s27 = sadd.s32 %s1628_s9, %s1479_s8  ;;  %s2767_s1 = sld [smem:[#allocation22_spill]] }
  0x1d   : > { %s1481_s26 = sshll.u32 %s204_s27, 6  ;;  %p1485_p8 = scmp.ge.s32.totalorder %s2203_s25, 1 }
  0x1e   : > { %s2353_s6 = scalar_lea.sflag [#allocation7], %s193_s5  ;;  %p1969_p9 = pneg %p2345_p7 }
  0x1f   : > { %s1980_s7 = scalar_lea.vmem %s208_s11, 16384  ;;  %s2205_s30 = smov [#allocation6]  }
  0x20   : > { %p1981_p10 = scmp.ne.s32.totalorder %s208_s11, %s1980_s7  ;;  %s1985_s10 = sshll.u32 %s2205_s30, 4  ;;  %s1986_s10 = int_to_ptr.vmem [resolvable:$false] %s1985_s10 }
  0x21   : > { %s1987_s2 = scalar_lea.vmem %s1986_s10, 32768  ;;  %p1988_p13 = scmp.lt.s32.totalorder %s208_s11, %s1986_s10 }
  0x22   : > { %s206_s21 = scalar_lea.hbm %s2767_s1, %s1481_s26  ;;  %p1983_p11 = pnand %p1981_p10, %p1969_p9 }
  0x23   : > { %p1989_p2 = scmp.lt.s32.totalorder %s1987_s2, %s1980_s7 }
  0x24   : > { %p1984_p12 = pneg %p1983_p11 }
  0x25   : > { %p1990_p3 = por %p1989_p2, %p1988_p13 }
  0x27   : > { %p1991_p4 = pnand %p1990_p3, %p1984_p12 }
  0x29   : > { %1994 = shalt.err (!%p1991_p4)
}
  0x2a   : > { %s2206_s3 = smov 384   ;;  %s2207_s22 = smov 128  }
  0x2b   : > { %s2208_s2 = smov 8   ;;  %p234_p4 = scmp.lt.s32.totalorder %s2203_s25, 10 }
  0x2c   : > { %1643 = dma.hbm_to_vmem [thread:$0]  (!%p2345_p7), %s206_s21, 16384, %s208_s11, %s2353_s6, %s2206_s3, %s2207_s22, %s2208_s2  }
  0x2d   : > { %p2363_p9 = pnand %p1485_p8, %p234_p4  ;;  %s50_s27 = sadd.s32 1, %s2183_s20 }
  0x2e   : > { %p57_p10 = scmp.ne.s32.totalorder %s2183_s20, %s2179_s19  ;;  %p63_p12 = scmp.ne.s32.totalorder %s2179_s19, %s2175_s18 }
  0x2f   : > { %s2373_s5 = scalar_select %p48_p5, %s2183_s20, %s50_s27  }
  0x30   : > { %p59_p11 = por %p58_p1, %p57_p10  ;;  %s169_s8 = sand.u32 1, %s2183_s20  }
  0x31   : > { %2769 = sst [smem:[#allocation19_spill]] %s2373_s5  ;;  %s1625_s9 = sshll.u32 %s2195_s23, 10 }
  0x32   : > { %s1474_s7 = sshll.u32 %s169_s8, 7  ;;  %s2770_s0 = sld [smem:[#allocation21_spill]] }
  0x33   : > { %s173_s11 = scalar_lea.vmem [#allocation3], %s1474_s7  ;;  %p2386_p7 = pnand %p1651_p6, %p59_p11 }
  0x34   : > { %s183_s10 = sshll.u32 %s173_s11, 4  ;;  %s170_s22 = scalar_lea.sflag [#allocation4], %s169_s8  ;;  %s184_s10 = int_to_ptr.vmem [resolvable:$true] %s183_s10 }
  0x35   : > { %p1997_p5 = pneg %p2386_p7  ;;  %s2008_s2 = scalar_lea.vmem %s184_s10, 2048 }
  0x36   : > { %p2009_p8 = scmp.ne.s32.totalorder %s184_s10, %s2008_s2  ;;  %s2209_s27 = smov [#allocation3]  }
  0x37   : > { %s2013_s1 = sshll.u32 %s2209_s27, 4  ;;  %s2014_s1 = int_to_ptr.vmem [resolvable:$false] %s2013_s1 }
  0x38   : > { %s182_s21 = scalar_lea.hbm %s2770_s0, %s1625_s9  ;;  %p2011_p13 = pnand %p2009_p8, %p1997_p5 }
  0x39   : > { %s2015_s9 = scalar_lea.vmem %s2014_s1, 4096  ;;  %p2016_p3 = scmp.lt.s32.totalorder %s184_s10, %s2014_s1 }
  0x3a   : > { %p2012_p2 = pneg %p2011_p13  ;;  %p2017_p4 = scmp.lt.s32.totalorder %s2015_s9, %s2008_s2 }
  0x3c   : > { %p2018_p10 = por %p2017_p4, %p2016_p3 }
  0x3e   : > { %p2019_p11 = pnand %p2018_p10, %p2012_p2 }
  0x40   : > { %2022 = shalt.err (!%p2019_p11)
}
  0x41   : > { %s2210_s7 = smov 3072   ;;  %s2211_s1 = smov 1024  }
  0x42   : > { %s2212_s8 = smov 64   ;;  %s2395_s30 = sadd.s32 4294967295, %s2203_s25  }
  0x43   : > { %1640 = dma.hbm_to_vmem [thread:$0]  (!%p2386_p7), %s182_s21, 2048, %s184_s10, %s170_s22, %s2210_s7, %s2211_s1, %s2212_s8  }
  0x44   : > { %s1471_s29 = sadd.s32 4294967294, %s2203_s25   ;;  %p64_p5 = scmp.eq.s32.totalorder %s2395_s30, 0 }
  0x45   : > { %s2772_s11 = sadd.s32 1, %s2199_s24  ;;  %p2774_p13 = scmp.ne.s32.totalorder %s2167_s16, %s2163_s15 }
  0x46   : > { %s2811_s11 = smov (!%p2311_p0, %s2772_s11), %s2199_s24  ;;  %p2407_p8 = por %p64_p5, %p63_p12 }
  0x47   : > { %p2414_p7 = por %p2774_p13, %p64_p5  ;;  %p39_p2 = scmp.ge.s32.totalorder %s2811_s11, 3 }
  0x48   : > { %s104_s10 = sadd.s32 1, %s2159_s14  ;;  %p111_p3 = scmp.ne.s32.totalorder %s2159_s14, %s2155_s13 }
  0x49   : > { %p117_p4 = scmp.ne.s32.totalorder %s2155_s13, %s2151_s12  ;;  %s2813_s11 = smov (%p39_p2, %s2811_s11), 0 }
  0x4a   : > { %2776 = sst [smem:[#allocation20_spill]] %s2813_s11  ;;  %p2427_p0 = por %p111_p3, %p58_p1 }
  0x4b   : > { %p2434_p12 = por %p117_p4, %p64_p5  ;;  %s74_s28 = ssub.s32 %s2199_s24, %s2813_s11 }
  0x4c   : > { %p143_p10 = scmp.eq.s32.totalorder %s2395_s30, 8  ;;  %s75_s3 = sor.u32 %s74_s28, %s2333_s4 }
  0x4d   : > { %s2778_s18 = scalar_select %p2434_p12, 1, 0 }
  0x4e   : > { %p102_p11 = scmp.eq.s32.totalorder %s74_s28, 0  ;;  %p76_p13 = scmp.eq.s32.totalorder %s75_s3, 0 }
  0x4f   : > { %p2442_p2 = por %p143_p10, %p111_p3  ;;  %s2780_s9 = sadd.s32 1, %s2171_s17 }
  0x50   : > { %s2447_s27 = scalar_select %p102_p11, %s2159_s14, %s104_s10  }
  0x51   : > { %s2779_s22 = scalar_select %p2442_p2, 1, 0 }
  0x52   : > { %s2452_s7 = scalar_select %p76_p13, %s2171_s17, %s2780_s9  }
  0x53   : > { %p149_p1 = scmp.eq.s32.totalorder %s1471_s29, 8  ;;  %s219_s1 = sand.u32 1, %s2159_s14  }
  0x54   : > { %s1482_s8 = sshll.u32 %s219_s1, 1  ;;  %s1626_s0 = sshll.u32 %s2199_s24, 5 }
  0x55   : > { %p2459_p5 = por %p149_p1, %p117_p4  ;;  %s2782_s3 = sld [smem:[#allocation23_spill]] }
  0x56   : > { %s221_s5 = scalar_lea.vmem [#allocation8], %s1482_s8  ;;  %p2470_p3 = pnand %p1651_p6, %p2427_p0 }
  0x57   : > { %s2781_s11 = scalar_select %p2459_p5, 1, 0 }
  0x58   : > { %s229_s20 = sshll.u32 %s221_s5, 4  ;;  %p2025_p10 = pneg %p2470_p3  ;;  %s230_s20 = int_to_ptr.vmem [resolvable:$true] %s229_s20 }
  0x59   : > { %s2036_s29 = scalar_lea.vmem %s230_s20, 32  ;;  %s2213_s9 = smov [#allocation8]  }
  0x5a   : > { %p2037_p4 = scmp.ne.s32.totalorder %s230_s20, %s2036_s29  ;;  %s2041_s1 = sshll.u32 %s2213_s9, 4  ;;  %s2042_s1 = int_to_ptr.vmem [resolvable:$false] %s2041_s1 }
  0x5b   : > { %s227_s23 = scalar_lea.hbm %s2782_s3, %s1626_s0  ;;  %s2043_s0 = scalar_lea.vmem %s2042_s1, 64 }
  0x5c   : > { %p2039_p11 = pnand %p2037_p4, %p2025_p10  ;;  %p2044_p1 = scmp.lt.s32.totalorder %s230_s20, %s2042_s1 }
  0x5d   : > { %p2045_p5 = scmp.lt.s32.totalorder %s2043_s0, %s2036_s29 }
  0x5e   : > { %p2040_p13 = pneg %p2039_p11 }
  0x5f   : > { %p2046_p2 = por %p2045_p5, %p2044_p1 }
  0x61   : > { %p2047_p12 = pnand %p2046_p2, %p2040_p13 }
  0x63   : > { %2050 = shalt.err (!%p2047_p12)
}
  0x64   : > { %1646 = dma.hbm_to_vmem [thread:$0]  (!%p2470_p3), %s227_s23, 32, %s230_s20, %s2353_s6  }
  0x65   : > { %238 = sbr.rel (%p2363_p9) target bundleno = 506 (0x1fa), region = 32  ;;  %s240_s5 = sand.u32 (!%p2363_p9), 1, %s2179_s19  }
  0x66   : > { %s1486_s15 = sshll.u32 (!%p2363_p9), %s240_s5, 7  ;;  %s241_s8 = scalar_lea.sflag (!%p2363_p9), [#allocation4], %s240_s5 }
  0x67   : > { %s2482_s4 = scalar_lea.vmem (!%p2363_p9), [#allocation3], %s1486_s15 }
  0x6a   : > { %2134 = dma.done.wait (%p2407_p8), %s241_s8, 2048  }
  0x6b   : > { %2136 = vsyncadd (%p2407_p8), %s241_s8, 4294965248  ;;  %s249_s28 = sand.u32 1, %s2395_s30   ;;  %s251_s20 = sand.u32 1, %s2167_s16  }
  0x6c   : > { %s1487_s23 = sshll.u32 %s251_s20, 10  ;;  %s250_s6 = scalar_lea.sflag [#allocation7], %s249_s28 }
  0x6d   : > { %s2490_s26 = scalar_lea.vmem [#allocation6], %s1487_s23 }
  0x6e   : > { %2138 = dma.done.wait (%p2414_p7), %s250_s6, 16384  }
  0x6f   : > { %2140 = vsyncadd (%p2414_p7), %s250_s6, 4294950912  ;;  %s2497_s3 = sand.u32 1, %s2155_s13   ;;  %p2784_p6 = scmp.ne.s32.totalorder %s2778_s18, 0 }
  0x70   : > { %s1488_s2 = sshll.u32 %s2497_s3, 1 }
  0x71   : > { %s2500_s10 = scalar_lea.vmem [#allocation8], %s1488_s2 }
  0x72   : > { %2142 = dma.done.wait (%p2784_p6), %s250_s6, 32  }
  0x73   : > { %2144 = vsyncadd (%p2784_p6), %s250_s6, 4294967264  ;;  %s1489_s30 = sshll.u32 %s2497_s3, 5  ;;  %s2785_s9 = sld [smem:[#allocation15_spill]] }
  0x74   : > { %s2507_s29 = scalar_lea.vmem [#allocation9], %s1489_s30 }
  0x79   : > { %p1490_p9 = scmp.ne.s32.totalorder %s2785_s9, 0 }
  0x7b   : > { %305 = sbr.rel (%p1490_p9) target bundleno = 131 (0x83), region = 48 }
  0x80   : > { %v2214_v0 = vmov 0.0  }
  0x81   : > { %306 = vst [vmem:[#allocation2 + $0x10] sm:$0xff] %v2214_v0  ;;  %307 = vst [vmem:[#allocation2] sm:$0xff] %v2214_v0 }
  0x82   : > { %308 = vst [vmem:[#allocation2 + $0x18] sm:$0xff] %v2214_v0  ;;  %309 = vst [vmem:[#allocation2 + $0x8] sm:$0xff] %v2214_v0 }
  0x83 PF: > { %v1775_v1 = vld [vmem:[%s2490_s26 + $0x74] ss:$8 sps:$4 sm:$0xff]   ;;  %v1779_v3 = vld [vmem:[%s2490_s26 + $0x70] ss:$8 sps:$4 sm:$0xff]   ;;  %v1781_v5 = vld [vmem:[%s2490_s26 + $0x64] ss:$8 sps:$4 sm:$0xff]  }
  0x84   : > { %v1777_v2 = vld [vmem:[%s2490_s26 + $0x174] ss:$8 sps:$4 sm:$0xff]   ;;  %1106 = vmatprep.subr.bf16.mxu0 %v1775_v1  ;;  %v1780_v4 = vld [vmem:[%s2490_s26 + $0x170] ss:$8 sps:$4 sm:$0xff]   ;;  %v1783_v6 = vld [vmem:[%s2490_s26 + $0x164] ss:$8 sps:$4 sm:$0xff]  }
  0x85   : > { %1149 = vmatprep.subr.bf16.mxu1 %v1777_v2  ;;  %1107 = vmatpush1.bf16.msra.mxu0 %v1779_v3  ;;  %v1785_v7 = vld [vmem:[%s2490_s26 + $0x60] ss:$8 sps:$4 sm:$0xff]   ;;  %v1787_v9 = vld [vmem:[%s2490_s26 + $0x54] ss:$8 sps:$4 sm:$0xff]   ;;  %v1791_v11 = vld [vmem:[%s2490_s26 + $0x50] ss:$8 sps:$4 sm:$0xff]  }
  0x86   : > { %1150 = vmatpush1.bf16.msra.mxu1 %v1780_v4  ;;  %1108 = vmatprep.subr.bf16.mxu0 %v1781_v5  ;;  %v1786_v8 = vld [vmem:[%s2490_s26 + $0x160] ss:$8 sps:$4 sm:$0xff]   ;;  %v1789_v10 = vld [vmem:[%s2490_s26 + $0x154] ss:$8 sps:$4 sm:$0xff]   ;;  %v1792_v12 = vld [vmem:[%s2490_s26 + $0x150] ss:$8 sps:$4 sm:$0xff]  }
  0x87   : > { %1151 = vmatprep.subr.bf16.mxu1 %v1783_v6  ;;  %v1793_v13 = vld [vmem:[%s2490_s26 + $0x44] ss:$8 sps:$4 sm:$0xff]   ;;  %v1797_v15 = vld [vmem:[%s2490_s26 + $0x40] ss:$8 sps:$4 sm:$0xff]   ;;  %v1799_v17 = vld [vmem:[%s2490_s26 + $0x34] ss:$8 sps:$4 sm:$0xff]  }
  0x88   : > { %v1795_v14 = vld [vmem:[%s2490_s26 + $0x144] ss:$8 sps:$4 sm:$0xff]   ;;  %v1798_v16 = vld [vmem:[%s2490_s26 + $0x140] ss:$8 sps:$4 sm:$0xff]   ;;  %v1801_v18 = vld [vmem:[%s2490_s26 + $0x134] ss:$8 sps:$4 sm:$0xff]  }
  0x89   : > { %1109 = vmatpush1.bf16.msra.mxu0 %v1785_v7  ;;  %v1803_v19 = vld [vmem:[%s2490_s26 + $0x30] ss:$8 sps:$4 sm:$0xff]   ;;  %v1805_v21 = vld [vmem:[%s2490_s26 + $0x24] ss:$8 sps:$4 sm:$0xff]   ;;  %v1809_v23 = vld [vmem:[%s2490_s26 + $0x20] ss:$8 sps:$4 sm:$0xff]  }
  0x8a   : > { %1152 = vmatpush1.bf16.msra.mxu1 %v1786_v8  ;;  %1110 = vmatprep.subr.bf16.mxu0 %v1787_v9  ;;  %v1804_v20 = vld [vmem:[%s2490_s26 + $0x130] ss:$8 sps:$4 sm:$0xff]   ;;  %v1807_v22 = vld [vmem:[%s2490_s26 + $0x124] ss:$8 sps:$4 sm:$0xff]   ;;  %v1810_v24 = vld [vmem:[%s2490_s26 + $0x120] ss:$8 sps:$4 sm:$0xff]  }
  0x8b   : > { %1153 = vmatprep.subr.bf16.mxu1 %v1789_v10  ;;  %v1811_v25 = vld [vmem:[%s2490_s26 + $0x14] ss:$8 sps:$4 sm:$0xff]   ;;  %v1815_v27 = vld [vmem:[%s2490_s26 + $0x10] ss:$8 sps:$4 sm:$0xff]   ;;  %v1817_v29 = vld [vmem:[%s2490_s26 + $0x4] ss:$8 sps:$4 sm:$0xff]  }
  0x8c   : > { %v1813_v26 = vld [vmem:[%s2490_s26 + $0x114] ss:$8 sps:$4 sm:$0xff]   ;;  %v1816_v28 = vld [vmem:[%s2490_s26 + $0x110] ss:$8 sps:$4 sm:$0xff]   ;;  %v1819_v30 = vld [vmem:[%s2490_s26 + $0x104] ss:$8 sps:$4 sm:$0xff]  }
  0x8d   : > { %1111 = vmatpush1.bf16.msra.mxu0 %v1791_v11  ;;  %v1821_v31 = vld [vmem:[%s2490_s26] ss:$8 sps:$4 sm:$0xff]   ;;  %v1823_v33 = vld [vmem:[%s2490_s26 + $0xf4] ss:$8 sps:$4 sm:$0xff]   ;;  %v1827_v35 = vld [vmem:[%s2490_s26 + $0xf0] ss:$8 sps:$4 sm:$0xff]  }
  0x8e   : > { %1154 = vmatpush1.bf16.msra.mxu1 %v1792_v12  ;;  %1112 = vmatprep.subr.bf16.mxu0 %v1793_v13  ;;  %v1822_v32 = vld [vmem:[%s2490_s26 + $0x100] ss:$8 sps:$4 sm:$0xff]   ;;  %v1825_v34 = vld [vmem:[%s2490_s26 + $0x1f4] ss:$8 sps:$4 sm:$0xff]   ;;  %v1828_v36 = vld [vmem:[%s2490_s26 + $0x1f0] ss:$8 sps:$4 sm:$0xff]  }
  0x8f   : > { %1155 = vmatprep.subr.bf16.mxu1 %v1795_v14  ;;  %v1829_v37 = vld [vmem:[%s2490_s26 + $0xe4] ss:$8 sps:$4 sm:$0xff]   ;;  %v1833_v39 = vld [vmem:[%s2490_s26 + $0xe0] ss:$8 sps:$4 sm:$0xff]   ;;  %v1835_v41 = vld [vmem:[%s2490_s26 + $0xd4] ss:$8 sps:$4 sm:$0xff]  }
  0x90   : > { %v1831_v38 = vld [vmem:[%s2490_s26 + $0x1e4] ss:$8 sps:$4 sm:$0xff]   ;;  %v1834_v40 = vld [vmem:[%s2490_s26 + $0x1e0] ss:$8 sps:$4 sm:$0xff]   ;;  %v1837_v42 = vld [vmem:[%s2490_s26 + $0x1d4] ss:$8 sps:$4 sm:$0xff]  }
  0x91   : > { %1113 = vmatpush1.bf16.msra.mxu0 %v1797_v15  ;;  %v1839_v43 = vld [vmem:[%s2490_s26 + $0xd0] ss:$8 sps:$4 sm:$0xff]   ;;  %v1841_v45 = vld [vmem:[%s2490_s26 + $0xc4] ss:$8 sps:$4 sm:$0xff]   ;;  %v1845_v51 = vld [vmem:[%s2490_s26 + $0xc0] ss:$8 sps:$4 sm:$0xff]  }
  0x92   : > { %1156 = vmatpush1.bf16.msra.mxu1 %v1798_v16  ;;  %1114 = vmatprep.subr.bf16.mxu0 %v1799_v17  ;;  %v1840_v44 = vld [vmem:[%s2490_s26 + $0x1d0] ss:$8 sps:$4 sm:$0xff]   ;;  %v1843_v46 = vld [vmem:[%s2490_s26 + $0x1c4] ss:$8 sps:$4 sm:$0xff]   ;;  %v1846_v52 = vld [vmem:[%s2490_s26 + $0x1c0] ss:$8 sps:$4 sm:$0xff]  }
  0x93   : > { %1157 = vmatprep.subr.bf16.mxu1 %v1801_v18  ;;  %v315_v47 = vld [vmem:[%s2482_s4 + $0x8] sm:$0xff]  ;;  %v317_v49 = vld [vmem:[%s2482_s4 + $0x18] sm:$0xff]  ;;  %v314_v7 = vld [vmem:[%s2482_s4] sm:$0xff]  ;;  %s2786_s21 = sld [smem:[#allocation15_spill]] }
  0x94   : > { %v323_v48 = vld [vmem:[%s2482_s4 + $0x48] sm:$0xff]  ;;  %v325_v50 = vld [vmem:[%s2482_s4 + $0x58] sm:$0xff]  ;;  %v322_v8 = vld [vmem:[%s2482_s4 + $0x40] sm:$0xff] }
  0x95   : > { %1115 = vmatpush1.bf16.msra.mxu0 %v1803_v19  ;;  %v1847_v53 = vld [vmem:[%s2490_s26 + $0xb4] ss:$8 sps:$4 sm:$0xff]   ;;  %v331_v54 = vpack.c.bf16 %v323_v48, %v315_v47  ;;  %v333_v55 = vpack.c.bf16 %v325_v50, %v317_v49  ;;  %v1851_v57 = vld [vmem:[%s2490_s26 + $0xb0] ss:$8 sps:$4 sm:$0xff]   ;;  %v1853_v59 = vld [vmem:[%s2490_s26 + $0xa4] ss:$8 sps:$4 sm:$0xff]   ;;  %v330_v13 = vpack.c.bf16 %v322_v8, %v314_v7 }
  0x96   : > { %1158 = vmatpush1.bf16.msra.mxu1 %v1804_v20  ;;  %1116 = vmatprep.subr.bf16.mxu0 %v1805_v21  ;;  %v1849_v56 = vld [vmem:[%s2490_s26 + $0x1b4] ss:$8 sps:$4 sm:$0xff]   ;;  %v1852_v58 = vld [vmem:[%s2490_s26 + $0x1b0] ss:$8 sps:$4 sm:$0xff]   ;;  %v1855_v60 = vld [vmem:[%s2490_s26 + $0x1a4] ss:$8 sps:$4 sm:$0xff]  }
  0x97   : > { %1159 = vmatprep.subr.bf16.mxu1 %v1807_v22  ;;  %1138 = vmatprep.mubr.bf16.mxu0 %v331_v54  ;;  %v1857_v61 = vld [vmem:[%s2490_s26 + $0xa0] ss:$8 sps:$4 sm:$0xff]   ;;  %v1859_v63 = vld [vmem:[%s2490_s26 + $0x94] ss:$8 sps:$4 sm:$0xff]   ;;  %v1863_v1 = vld [vmem:[%s2490_s26 + $0x90] ss:$8 sps:$4 sm:$0xff]  }
  0x98   : > { %1181 = vmatprep.mubr.bf16.mxu1 %v333_v55  ;;  %v1858_v62 = vld [vmem:[%s2490_s26 + $0x1a0] ss:$8 sps:$4 sm:$0xff]   ;;  %v1861_v0 = vld [vmem:[%s2490_s26 + $0x194] ss:$8 sps:$4 sm:$0xff]   ;;  %v1864_v2 = vld [vmem:[%s2490_s26 + $0x190] ss:$8 sps:$4 sm:$0xff]  }
  0x99   : > { %1117 = vmatpush1.bf16.msra.mxu0 %v1809_v23  ;;  %v1865_v3 = vld [vmem:[%s2490_s26 + $0x84] ss:$8 sps:$4 sm:$0xff]   ;;  %v1869_v5 = vld [vmem:[%s2490_s26 + $0x80] ss:$8 sps:$4 sm:$0xff]   ;;  %v316_v9 = vld [vmem:[%s2482_s4 + $0x10] sm:$0xff]  ;;  %p1619_p8 = scmp.ne.s32.totalorder %s2786_s21, 2 }
  0x9a   : > { %1160 = vmatpush1.bf16.msra.mxu1 %v1810_v24  ;;  %1118 = vmatprep.subr.bf16.mxu0 %v1811_v25  ;;  %v1867_v4 = vld [vmem:[%s2490_s26 + $0x184] ss:$8 sps:$4 sm:$0xff]   ;;  %v1870_v6 = vld [vmem:[%s2490_s26 + $0x180] ss:$8 sps:$4 sm:$0xff]   ;;  %v324_v10 = vld [vmem:[%s2482_s4 + $0x50] sm:$0xff] }
  0x9b   : > { %1161 = vmatprep.subr.bf16.mxu1 %v1813_v26  ;;  %v1873_v11 = vld [vmem:[%s2490_s26 + $0x274] ss:$8 sps:$4 sm:$0xff]   ;;  %v332_v14 = vpack.c.bf16 %v324_v10, %v316_v9  ;;  %v1871_v15 = vld [vmem:[%s2490_s26 + $0x270] ss:$8 sps:$4 sm:$0xff]   ;;  %v1879_v17 = vld [vmem:[%s2490_s26 + $0x264] ss:$8 sps:$4 sm:$0xff]  }
  0x9c   : > { %v1876_v12 = vld [vmem:[%s2490_s26 + $0x374] ss:$8 sps:$4 sm:$0xff]   ;;  %v1874_v16 = vld [vmem:[%s2490_s26 + $0x370] ss:$8 sps:$4 sm:$0xff]   ;;  %v1882_v18 = vld [vmem:[%s2490_s26 + $0x364] ss:$8 sps:$4 sm:$0xff]  }
  0x9d   : > { %1119 = vmatpush1.bf16.msra.mxu0 %v1815_v27  ;;  %v1877_v19 = vld [vmem:[%s2490_s26 + $0x260] ss:$8 sps:$4 sm:$0xff]   ;;  %v1885_v21 = vld [vmem:[%s2490_s26 + $0x254] ss:$8 sps:$4 sm:$0xff]   ;;  %v1883_v23 = vld [vmem:[%s2490_s26 + $0x250] ss:$8 sps:$4 sm:$0xff]  }
  0x9e   : > { %1162 = vmatpush1.bf16.msra.mxu1 %v1816_v28  ;;  %1120 = vmatprep.subr.bf16.mxu0 %v1817_v29  ;;  %v1880_v20 = vld [vmem:[%s2490_s26 + $0x360] ss:$8 sps:$4 sm:$0xff]   ;;  %v1888_v22 = vld [vmem:[%s2490_s26 + $0x354] ss:$8 sps:$4 sm:$0xff]   ;;  %v1886_v24 = vld [vmem:[%s2490_s26 + $0x350] ss:$8 sps:$4 sm:$0xff]  }
  0x9f   : > { %1163 = vmatprep.subr.bf16.mxu1 %v1819_v30  ;;  %v1891_v25 = vld [vmem:[%s2490_s26 + $0x244] ss:$8 sps:$4 sm:$0xff]   ;;  %v1889_v27 = vld [vmem:[%s2490_s26 + $0x240] ss:$8 sps:$4 sm:$0xff]   ;;  %v1897_v29 = vld [vmem:[%s2490_s26 + $0x234] ss:$8 sps:$4 sm:$0xff]  }
  0xa0   : > { %v1894_v26 = vld [vmem:[%s2490_s26 + $0x344] ss:$8 sps:$4 sm:$0xff]   ;;  %v1892_v28 = vld [vmem:[%s2490_s26 + $0x340] ss:$8 sps:$4 sm:$0xff]   ;;  %v1900_v30 = vld [vmem:[%s2490_s26 + $0x334] ss:$8 sps:$4 sm:$0xff]  }
  0xa1   : > { %1121 = vmatpush1.bf16.msra.mxu0 %v1821_v31  ;;  %v1895_v31 = vld [vmem:[%s2490_s26 + $0x230] ss:$8 sps:$4 sm:$0xff]   ;;  %v1913_v49 = vld [vmem:[%s2490_s26 + $0x200] ss:$8 sps:$4 sm:$0xff]   ;;  %v1927_v55 = vld [vmem:[%s2490_s26 + $0x2e4] ss:$8 sps:$4 sm:$0xff]  }
  0xa2   : > { %1164 = vmatpush1.bf16.msra.mxu1 %v1822_v32  ;;  %1122 = vmatprep.subr.bf16.mxu0 %v1823_v33  ;;  %v1898_v32 = vld [vmem:[%s2490_s26 + $0x330] ss:$8 sps:$4 sm:$0xff]   ;;  %v1903_v33 = vld [vmem:[%s2490_s26 + $0x224] ss:$8 sps:$4 sm:$0xff]   ;;  %v1916_v50 = vld [vmem:[%s2490_s26 + $0x300] ss:$8 sps:$4 sm:$0xff]  }
  0xa3   : > { %1165 = vmatprep.subr.bf16.mxu1 %v1825_v34  ;;  %v1906_v34 = vld [vmem:[%s2490_s26 + $0x324] ss:$8 sps:$4 sm:$0xff]   ;;  %v329_v47 = vld [vmem:[%s2482_s4 + $0x78] sm:$0xff]  ;;  %v1949_v9 = vld [vmem:[%s2490_s26 + $0x2a0] ss:$8 sps:$4 sm:$0xff]  }
  0xa4   : > { %v1922_v54 = vld [vmem:[%s2490_s26 + $0x3f0] ss:$8 sps:$4 sm:$0xff]   ;;  %v1951_v7 = vld [vmem:[%s2490_s26 + $0x2a4] ss:$8 sps:$4 sm:$0xff]   ;;  %v1952_v10 = vld [vmem:[%s2490_s26 + $0x3a0] ss:$8 sps:$4 sm:$0xff]  }
  0xa5   : > { %1123 = vmatpush2.bf16.msra.mxu0 %v1827_v35  ;;  %v1901_v35 = vld [vmem:[%s2490_s26 + $0x220] ss:$8 sps:$4 sm:$0xff]   ;;  %v1954_v8 = vld [vmem:[%s2490_s26 + $0x3a4] ss:$8 sps:$4 sm:$0xff]  }
  0xa6   : > { %1166 = vmatpush2.bf16.msra.mxu1 %v1828_v36  ;;  %1124 = vmatprep.subr.bf16.mxu0 %v1829_v37  ;;  %v1904_v36 = vld [vmem:[%s2490_s26 + $0x320] ss:$8 sps:$4 sm:$0xff]   ;;  %v1909_v37 = vld [vmem:[%s2490_s26 + $0x214] ss:$8 sps:$4 sm:$0xff]  }
  0xa7   : > { %1167 = vmatprep.subr.bf16.mxu1 %v1831_v38  ;;  %v1912_v38 = vld [vmem:[%s2490_s26 + $0x314] ss:$8 sps:$4 sm:$0xff]  }
  0xa9   : > { %1125 = vmatpush2.bf16.msra.mxu0 %v1833_v39  ;;  %v1907_v39 = vld [vmem:[%s2490_s26 + $0x210] ss:$8 sps:$4 sm:$0xff]  }
  0xaa   : > { %1168 = vmatpush2.bf16.msra.mxu1 %v1834_v40  ;;  %1126 = vmatprep.subr.bf16.mxu0 %v1835_v41  ;;  %v1910_v40 = vld [vmem:[%s2490_s26 + $0x310] ss:$8 sps:$4 sm:$0xff]   ;;  %v319_v41 = vld [vmem:[%s2482_s4 + $0x28] sm:$0xff] }
  0xab   : > { %1169 = vmatprep.subr.bf16.mxu1 %v1837_v42  ;;  %v327_v42 = vld [vmem:[%s2482_s4 + $0x68] sm:$0xff] }
  0xad   : > { %1127 = vmatpush2.bf16.msra.mxu0 %v1839_v43  ;;  %v321_v43 = vld [vmem:[%s2482_s4 + $0x38] sm:$0xff] }
  0xae   : > { %1170 = vmatpush2.bf16.msra.mxu1 %v1840_v44  ;;  %1128 = vmatprep.subr.bf16.mxu0 %v1841_v45  ;;  %v1915_v44 = vld [vmem:[%s2490_s26 + $0x204] ss:$8 sps:$4 sm:$0xff]   ;;  %v337_v48 = vpack.c.bf16 %v329_v47, %v321_v43 }
  0xaf   : > { %1171 = vmatprep.subr.bf16.mxu1 %v1843_v46  ;;  %v1918_v45 = vld [vmem:[%s2490_s26 + $0x304] ss:$8 sps:$4 sm:$0xff]   ;;  %v335_v46 = vpack.c.bf16 %v327_v42, %v319_v41 }
  0xb1   : > { %1129 = vmatpush2.bf16.msra.mxu0 %v1845_v51  ;;  %v1921_v51 = vld [vmem:[%s2490_s26 + $0x2f4] ss:$8 sps:$4 sm:$0xff]  }
  0xb2   : > { %1172 = vmatpush2.bf16.msra.mxu1 %v1846_v52  ;;  %1130 = vmatprep.subr.bf16.mxu0 %v1847_v53  ;;  %v1924_v52 = vld [vmem:[%s2490_s26 + $0x3f4] ss:$8 sps:$4 sm:$0xff]   ;;  %v1919_v53 = vld [vmem:[%s2490_s26 + $0x2f0] ss:$8 sps:$4 sm:$0xff]  }
  0xb3   : > { %1173 = vmatprep.subr.bf16.mxu1 %v1849_v56  ;;  %v1930_v56 = vld [vmem:[%s2490_s26 + $0x3e4] ss:$8 sps:$4 sm:$0xff]  }
  0xb5   : > { %1131 = vmatpush2.bf16.msra.mxu0 %v1851_v57  ;;  %v1925_v57 = vld [vmem:[%s2490_s26 + $0x2e0] ss:$8 sps:$4 sm:$0xff]  }
  0xb6   : > { %1174 = vmatpush2.bf16.msra.mxu1 %v1852_v58  ;;  %1132 = vmatprep.subr.bf16.mxu0 %v1853_v59  ;;  %v1928_v58 = vld [vmem:[%s2490_s26 + $0x3e0] ss:$8 sps:$4 sm:$0xff]   ;;  %v1933_v59 = vld [vmem:[%s2490_s26 + $0x2d4] ss:$8 sps:$4 sm:$0xff]  }
  0xb7   : > { %1175 = vmatprep.subr.bf16.mxu1 %v1855_v60  ;;  %v1936_v60 = vld [vmem:[%s2490_s26 + $0x3d4] ss:$8 sps:$4 sm:$0xff]  }
  0xb9   : > { %1133 = vmatpush2.bf16.msra.mxu0 %v1857_v61  ;;  %v1931_v61 = vld [vmem:[%s2490_s26 + $0x2d0] ss:$8 sps:$4 sm:$0xff]  }
  0xba   : > { %1176 = vmatpush2.bf16.msra.mxu1 %v1858_v62  ;;  %1134 = vmatprep.subr.bf16.mxu0 %v1859_v63  ;;  %v1934_v62 = vld [vmem:[%s2490_s26 + $0x3d0] ss:$8 sps:$4 sm:$0xff]   ;;  %v1939_v63 = vld [vmem:[%s2490_s26 + $0x2c4] ss:$8 sps:$4 sm:$0xff]  }
  0xbb   : > { %1177 = vmatprep.subr.bf16.mxu1 %v1861_v0  ;;  %v1942_v0 = vld [vmem:[%s2490_s26 + $0x3c4] ss:$8 sps:$4 sm:$0xff]  }
  0xbd   : > { %1135 = vmatpush2.bf16.msra.mxu0 %v1863_v1  ;;  %v1937_v1 = vld [vmem:[%s2490_s26 + $0x2c0] ss:$8 sps:$4 sm:$0xff]  }
  0xbe   : > { %1178 = vmatpush2.bf16.msra.mxu1 %v1864_v2  ;;  %1136 = vmatprep.subr.bf16.mxu0 %v1865_v3  ;;  %v1940_v2 = vld [vmem:[%s2490_s26 + $0x3c0] ss:$8 sps:$4 sm:$0xff]   ;;  %v1945_v3 = vld [vmem:[%s2490_s26 + $0x2b4] ss:$8 sps:$4 sm:$0xff]  }
  0xbf   : > { %1179 = vmatprep.subr.bf16.mxu1 %v1867_v4  ;;  %v1948_v4 = vld [vmem:[%s2490_s26 + $0x3b4] ss:$8 sps:$4 sm:$0xff]  }
  0xc1   : > { %1137 = vmatpush2.bf16.msra.mxu0 %v1869_v5  ;;  %v1943_v5 = vld [vmem:[%s2490_s26 + $0x2b0] ss:$8 sps:$4 sm:$0xff]  }
  0xc2   : > { %1180 = vmatpush2.bf16.msra.mxu1 %v1870_v6  ;;  %1192 = vmatprep.subr.bf16.mxu0 %v1873_v11  ;;  %v1946_v6 = vld [vmem:[%s2490_s26 + $0x3b0] ss:$8 sps:$4 sm:$0xff]   ;;  %v1957_v11 = vld [vmem:[%s2490_s26 + $0x294] ss:$8 sps:$4 sm:$0xff]  }
  0xc3   : > { %1235 = vmatprep.subr.bf16.mxu1 %v1876_v12  ;;  %v1960_v12 = vld [vmem:[%s2490_s26 + $0x394] ss:$8 sps:$4 sm:$0xff]  }
  0xc4   : > { %1139 = vmatmul.mubr.bf16.vlgmr.msra.gmra.mxu0 %v330_v13  ;;  %v1955_v13 = vld [vmem:[%s2490_s26 + $0x290] ss:$8 sps:$4 sm:$0xff]  }
  0xc5   : > { %1182 = vmatmul.mubr.bf16.vlgmr.msra.gmra.mxu1 %v332_v14  ;;  %1193 = vmatpush1.bf16.msra.mxu0 %v1871_v15  ;;  %v1958_v14 = vld [vmem:[%s2490_s26 + $0x390] ss:$8 sps:$4 sm:$0xff]   ;;  %v1963_v15 = vld [vmem:[%s2490_s26 + $0x284] ss:$8 sps:$4 sm:$0xff]  }
  0xc6   : > { %1236 = vmatpush1.bf16.msra.mxu1 %v1874_v16  ;;  %1194 = vmatprep.subr.bf16.mxu0 %v1879_v17  ;;  %v1966_v16 = vld [vmem:[%s2490_s26 + $0x384] ss:$8 sps:$4 sm:$0xff]   ;;  %v1961_v17 = vld [vmem:[%s2490_s26 + $0x280] ss:$8 sps:$4 sm:$0xff]  }
  0xc7   : > { %1237 = vmatprep.subr.bf16.mxu1 %v1882_v18  ;;  %1224 = vmatprep.mubr.bf16.mxu0 %v335_v46  ;;  %v1964_v18 = vld [vmem:[%s2490_s26 + $0x380] ss:$8 sps:$4 sm:$0xff]  }
  0xc8   : > { %1267 = vmatprep.mubr.bf16.mxu1 %v337_v48 }
  0xc9   : > { %1195 = vmatpush1.bf16.msra.mxu0 %v1877_v19  ;;  %v318_v19 = vld [vmem:[%s2482_s4 + $0x20] sm:$0xff] }
  0xca   : > { %1238 = vmatpush1.bf16.msra.mxu1 %v1880_v20  ;;  %1196 = vmatprep.subr.bf16.mxu0 %v1885_v21  ;;  %v326_v20 = vld [vmem:[%s2482_s4 + $0x60] sm:$0xff]  ;;  %v320_v21 = vld [vmem:[%s2482_s4 + $0x30] sm:$0xff] }
  0xcb   : > { %1239 = vmatprep.subr.bf16.mxu1 %v1888_v22  ;;  %v328_v22 = vld [vmem:[%s2482_s4 + $0x70] sm:$0xff] }
  0xcd   : > { %1197 = vmatpush1.bf16.msra.mxu0 %v1883_v23  ;;  %v334_v23 = vpack.c.bf16 %v326_v20, %v318_v19 }
  0xce   : > { %1240 = vmatpush1.bf16.msra.mxu1 %v1886_v24  ;;  %1198 = vmatprep.subr.bf16.mxu0 %v1891_v25  ;;  %v336_v24 = vpack.c.bf16 %v328_v22, %v320_v21 }
  0xcf   : > { %1241 = vmatprep.subr.bf16.mxu1 %v1894_v26 }
  0xd1   : > { %1199 = vmatpush1.bf16.msra.mxu0 %v1889_v27 }
  0xd2   : > { %1242 = vmatpush1.bf16.msra.mxu1 %v1892_v28  ;;  %1200 = vmatprep.subr.bf16.mxu0 %v1897_v29 }
  0xd3   : > { %1243 = vmatprep.subr.bf16.mxu1 %v1900_v30 }
  0xd5   : > { %1201 = vmatpush1.bf16.msra.mxu0 %v1895_v31 }
  0xd6   : > { %1244 = vmatpush1.bf16.msra.mxu1 %v1898_v32  ;;  %1202 = vmatprep.subr.bf16.mxu0 %v1903_v33 }
  0xd7   : > { %1245 = vmatprep.subr.bf16.mxu1 %v1906_v34 }
  0xd9   : > { %1203 = vmatpush1.bf16.msra.mxu0 %v1901_v35 }
  0xda   : > { %1246 = vmatpush1.bf16.msra.mxu1 %v1904_v36  ;;  %1204 = vmatprep.subr.bf16.mxu0 %v1909_v37 }
  0xdb   : > { %1247 = vmatprep.subr.bf16.mxu1 %v1912_v38  ;;  %v310_v38 = vld [vmem:[#allocation2 + $0x10] sm:$0xff] }
  0xdd   : > { %1205 = vmatpush1.bf16.msra.mxu0 %v1907_v39 }
  0xde   : > { %1248 = vmatpush1.bf16.msra.mxu1 %v1910_v40  ;;  %1206 = vmatprep.subr.bf16.mxu0 %v1915_v44  ;;  %v311_v44 = vld [vmem:[#allocation2] sm:$0xff] }
  0xdf   : > { %1249 = vmatprep.subr.bf16.mxu1 %v1918_v45 }
  0xe1   : > { %1207 = vmatpush1.bf16.msra.mxu0 %v1913_v49 }
  0xe2   : > { %1250 = vmatpush1.bf16.msra.mxu1 %v1916_v50  ;;  %1208 = vmatprep.subr.bf16.mxu0 %v1921_v51  ;;  %v312_v51 = vld [vmem:[#allocation2 + $0x18] sm:$0xff] }
  0xe3   : > { %1251 = vmatprep.subr.bf16.mxu1 %v1924_v52 }
  0xe5   : > { %1209 = vmatpush2.bf16.msra.mxu0 %v1919_v53 }
  0xe6   : > { %1252 = vmatpush2.bf16.msra.mxu1 %v1922_v54  ;;  %1210 = vmatprep.subr.bf16.mxu0 %v1927_v55 }
  0xe7   : > { %1253 = vmatprep.subr.bf16.mxu1 %v1930_v56  ;;  %v313_v56 = vld [vmem:[#allocation2 + $0x8] sm:$0xff] }
  0xe9   : > { %1211 = vmatpush2.bf16.msra.mxu0 %v1925_v57 }
  0xea   : > { %1254 = vmatpush2.bf16.msra.mxu1 %v1928_v58  ;;  %1212 = vmatprep.subr.bf16.mxu0 %v1933_v59 }
  0xeb   : > { %1255 = vmatprep.subr.bf16.mxu1 %v1936_v60 }
  0xed   : > { %1213 = vmatpush2.bf16.msra.mxu0 %v1931_v61 }
  0xee   : > { %1256 = vmatpush2.bf16.msra.mxu1 %v1934_v62  ;;  %1214 = vmatprep.subr.bf16.mxu0 %v1939_v63 }
  0xef   : > { %1257 = vmatprep.subr.bf16.mxu1 %v1942_v0 }
  0xf1   : > { %1215 = vmatpush2.bf16.msra.mxu0 %v1937_v1 }
  0xf2   : > { %1258 = vmatpush2.bf16.msra.mxu1 %v1940_v2  ;;  %1216 = vmatprep.subr.bf16.mxu0 %v1945_v3 }
  0xf3   : > { %1259 = vmatprep.subr.bf16.mxu1 %v1948_v4 }
  0xf5   : > { %1217 = vmatpush2.bf16.msra.mxu0 %v1943_v5 }
  0xf6   : > { %1260 = vmatpush2.bf16.msra.mxu1 %v1946_v6  ;;  %1218 = vmatprep.subr.bf16.mxu0 %v1951_v7 }
  0xf7   : > { %1261 = vmatprep.subr.bf16.mxu1 %v1954_v8 }
  0xf9   : > { %1219 = vmatpush2.bf16.msra.mxu0 %v1949_v9 }
  0xfa   : > { %1262 = vmatpush2.bf16.msra.mxu1 %v1952_v10  ;;  %1220 = vmatprep.subr.bf16.mxu0 %v1957_v11 }
  0xfb   : > { %1263 = vmatprep.subr.bf16.mxu1 %v1960_v12 }
  0xfd   : > { %1221 = vmatpush2.bf16.msra.mxu0 %v1955_v13 }
  0xfe   : > { %1264 = vmatpush2.bf16.msra.mxu1 %v1958_v14  ;;  %1222 = vmatprep.subr.bf16.mxu0 %v1963_v15 }
  0xff   : > { %1265 = vmatprep.subr.bf16.mxu1 %v1966_v16 }
 0x101   : > { %1223 = vmatpush2.bf16.msra.mxu0 %v1961_v17 }
 0x102   : > { %1266 = vmatpush2.bf16.msra.mxu1 %v1964_v18 }
 0x104   : > { %1225 = vmatmul.mubr.bf16.vlgmr.msra.gmra.mxu0 %v334_v23 }
 0x105   : > { %1268 = vmatmul.mubr.bf16.vlgmr.msra.gmra.mxu1 %v336_v24 }
 0x184   : > { %v1140_v25 = vpop.f32.mrf.mxu0 }
 0x185   : > { %v1183_v26 = vpop.f32.mrf.mxu1 }
 0x186   : > { %v1142_v27 = vpop.f32.mrf.mxu0  ;;  %v1184_v33 = vadd.f32 %v1183_v26, %v1140_v25 }
 0x187   : > { %v1185_v28 = vpop.f32.mrf.mxu1 }
 0x188   : > { %v1144_v29 = vpop.f32.mrf.mxu0  ;;  %v1186_v36 = vadd.f32 %v1185_v28, %v1142_v27 }
 0x189   : > { %v1187_v30 = vpop.f32.mrf.mxu1 }
 0x18a   : > { %v1146_v31 = vpop.f32.mrf.mxu0  ;;  %v1188_v41 = vadd.f32 %v1187_v30, %v1144_v29 }
 0x18b   : > { %v1189_v32 = vpop.f32.mrf.mxu1 }
 0x18c   : > { %v1190_v47 = vadd.f32 %v1189_v32, %v1146_v31 }
 0x1c4   : > { %v1226_v34 = vpop.f32.mrf.mxu0 }
 0x1c5   : > { %v1269_v35 = vpop.f32.mrf.mxu1  ;;  %v1227_v37 = vadd.f32 %v1226_v34, %v1184_v33 }
 0x1c6   : > { %v1228_v39 = vpop.f32.mrf.mxu0 }
 0x1c7   : > { %v1271_v40 = vpop.f32.mrf.mxu1  ;;  %v1270_v42 = vadd.f32 %v1269_v35, %v1227_v37  ;;  %v1229_v43 = vadd.f32 %v1228_v39, %v1186_v36 }
 0x1c8   : > { %v1230_v45 = vpop.f32.mrf.mxu0 }
 0x1c9   : > { %v1273_v46 = vpop.f32.mrf.mxu1  ;;  %v1278_v48 = vadd.f32 %v1270_v42, %v310_v38  ;;  %v1272_v49 = vadd.f32 %v1271_v40, %v1229_v43  ;;  %v1231_v50 = vadd.f32 %v1230_v45, %v1188_v41 }
 0x1ca   : > { %v1232_v52 = vpop.f32.mrf.mxu0 }
 0x1cb   : > { %1282 = vst [vmem:[#allocation2 + $0x10] sm:$0xff] %v1278_v48  ;;  %v1279_v53 = vadd.f32 %v1272_v49, %v311_v44  ;;  %v1274_v54 = vadd.f32 %v1273_v46, %v1231_v50  ;;  %v1233_v55 = vadd.f32 %v1232_v52, %v1190_v47  ;;  %v1275_v57 = vpop.f32.mrf.mxu1 }
 0x1cd   : > { %1283 = vst [vmem:[#allocation2] sm:$0xff] %v1279_v53  ;;  %v1280_v58 = vadd.f32 %v1274_v54, %v312_v51  ;;  %v1276_v59 = vadd.f32 %v1275_v57, %v1233_v55  ;;  %1289 = sbr.rel (%p1619_p8) target bundleno = 478 (0x1de), region = 52 }
 0x1cf   : > { %1284 = vst [vmem:[#allocation2 + $0x18] sm:$0xff] %v1280_v58  ;;  %v1281_v60 = vadd.f32 %v1276_v59, %v313_v56 }
 0x1d1   : > { %1285 = vst [vmem:[#allocation2 + $0x8] sm:$0xff] %v1281_v60 }
 0x1d2   : > { %v1296_v61 = vlaneseq  ;;  %v1294_v63 = vld [vmem:[%s2500_s10] sm:$0x3]  ;;  %v1290_v0 = vld [vmem:[#allocation2 + $0x10] sm:$0xff] }
 0x1d4   : > { %v1297_v62 = vshrl.u32 %v1296_v61, 7  ;;  %v1291_v3 = vld [vmem:[#allocation2] sm:$0xff] }
 0x1d6   : > { %v1298_v1 = vsub.s32 0, %v1297_v62  ;;  %v1302_v2 = vsub.s32 1, %v1297_v62  ;;  %v1292_v4 = vld [vmem:[#allocation2 + $0x18] sm:$0xff] }
 0x1d8   : > { %v1293_v5 = vld [vmem:[#allocation2 + $0x8] sm:$0xff]  ;;  %v1299_v6 = vrot.slane %v1294_v63, %v1298_v1  ;;  %v1303_v7 = vrot.slane %v1294_v63, %v1302_v2 }
 0x1da   : > { %v1306_v8 = vadd.f32 %v1299_v6, %v1290_v0  ;;  %v1307_v9 = vadd.f32 %v1303_v7, %v1291_v3  ;;  %v1308_v10 = vadd.f32 %v1299_v6, %v1292_v4  ;;  %v1309_v11 = vadd.f32 %v1303_v7, %v1293_v5 }
 0x1dc   : > { %1310 = vst [vmem:[%s2507_s29] sm:$0xff] %v1306_v8  ;;  %1311 = vst [vmem:[%s2507_s29 + $0x8] sm:$0xff] %v1307_v9 }
 0x1dd   : > { %1312 = vst [vmem:[%s2507_s29 + $0x10] sm:$0xff] %v1308_v10  ;;  %1313 = vst [vmem:[%s2507_s29 + $0x18] sm:$0xff] %v1309_v11 }
 0x1de PF: > { %s2787_s18 = sld [smem:[#allocation16_spill]]  ;;  %s1331_s28 = sshll.u32 %s2507_s29, 4  ;;  %s2667_s28 = int_to_ptr.vmem [resolvable:$true] %s1331_s28 }
 0x1df   : > { %s2788_s15 = sld [smem:[#allocation24_spill]]  ;;  %s1315_s20 = scalar_lea.sflag [#allocation5], %s2497_s3 }
 0x1e0   : > { %s2051_s23 = scalar_lea.vmem %s2667_s28, 512  ;;  %p2790_p0 = scmp.ne.s32.totalorder %s2779_s22, 0 }
 0x1e1   : > { %p2052_p7 = scmp.ne.s32.totalorder %s2667_s28, %s2051_s23  ;;  %s2215_s6 = smov [#allocation9]  }
 0x1e2   : > { %s2055_s26 = sshll.u32 %s2215_s6, 4  ;;  %s2056_s26 = int_to_ptr.vmem [resolvable:$false] %s2055_s26 }
 0x1e3   : > { %p2053_p12 = pnand %p2052_p7, %p2790_p0  ;;  %s2057_s2 = scalar_lea.vmem %s2056_s26, 1024 }
 0x1e4   : > { %s1627_s1 = sshll.u32 %s2787_s18, 8  ;;  %p2058_p5 = scmp.lt.s32.totalorder %s2667_s28, %s2056_s26 }
 0x1e5   : > { %s2789_s8 = smov %s2788_s15  ;;  %s2664_s4 = scalar_lea.hbm %s2788_s15, %s1627_s1 }
 0x1e6   : > { %p2054_p2 = pneg %p2053_p12  ;;  %p2059_p3 = scmp.lt.s32.totalorder %s2057_s2, %s2051_s23 }
 0x1e8   : > { %p2060_p10 = por %p2059_p3, %p2058_p5 }
 0x1ea   : > { %p2061_p4 = pnand %p2060_p10, %p2054_p2 }
 0x1ec   : > { %2064 = shalt.err (!%p2061_p4)
}
 0x1ed   : > { %s2065_s10 = scalar_lea.hbm %s2664_s4, 512  ;;  %s2069_s9 = scalar_lea.hbm %s2789_s8, 1536 }
 0x1ee   : > { %p2066_p11 = scmp.ne.s32.totalorder %s2664_s4, %s2065_s10  ;;  %p2070_p6 = scmp.lt.s32.totalorder %s2664_s4, %s2789_s8 }
 0x1ef   : > { %p2071_p9 = scmp.lt.s32.totalorder %s2069_s9, %s2065_s10 }
 0x1f0   : > { %p2067_p13 = pnand %p2066_p11, %p2790_p0 }
 0x1f1   : > { %p2072_p8 = por %p2071_p9, %p2070_p6 }
 0x1f2   : > { %p2068_p1 = pneg %p2067_p13 }
 0x1f4   : > { %p2073_p7 = pnand %p2072_p8, %p2068_p1 }
 0x1f6   : > { %2076 = shalt.err (!%p2073_p7)
}
 0x1f7   : > { %s2216_s1 = smov 256   ;;  %s2217_s0 = smov 768  }
 0x1f8   : > { %s2218_s5 = smov 16  }
 0x1f9   : > { %1635 = dma.vmem_to_hbm [thread:$0]  (%p2790_p0), %s2667_s28, 512, %s2664_s4, %s1315_s20, %s2216_s1, %s2217_s0, %s2218_s5  }
 0x1fa PF: > { %p1652_p12 = scmp.ge.s32.totalorder %s2203_s25, 2  ;;  %s1346_s15 = sand.u32 1, %s2151_s12  }
 0x1fb   : > { %p2791_p2 = scmp.ne.s32.totalorder %s2781_s11, 0  ;;  %s1347_s23 = scalar_lea.sflag [#allocation5], %s1346_s15 }
 0x1fd   : > { %p1648_p5 = pnand %p1652_p12, %p2791_p2 }
 0x1ff   : > { %p1649_p3 = pneg %p1648_p5 }
 0x201   : > { %2146 = dma.done.wait (%p1649_p3), %s1347_s23, 512  }
 0x202   : > { %2148 = vsyncadd (%p1649_p3), %s1347_s23, 4294966784  ;;  %s22_s25 = sadd.s32 1, %s2203_s25   ;;  %s2793_s22 = sld [smem:[#allocation14_spill]] }
 0x203   : > { %p2697_p10 = scmp.ge.s32.totalorder %s22_s25, 11   ;;  %s2794_s20 = sld [smem:[#allocation19_spill]] }
 0x204   : > { %s2795_s21 = sld [smem:[#allocation17_spill]]  ;;  %s2798_s12 = smov %s2155_s13 }
 0x205   : > { %s2796_s23 = sld [smem:[#allocation18_spill]]  ;;  %s2799_s13 = smov %s2159_s14 }
 0x206   : > { %s2797_s11 = sld [smem:[#allocation20_spill]]  ;;  %s2800_s14 = smov %s2447_s27 }
 0x207   : > { %s2801_s15 = smov %s2167_s16  ;;  %s2802_s16 = smov %s2171_s17 }
 0x208   : > { %s2803_s17 = smov %s2452_s7  ;;  %s2804_s18 = smov %s2179_s19 }
 0x209   : > { %s2805_s19 = smov %s2793_s22  ;;  %s2806_s22 = smov %s2199_s24 }
 0x20a   :  { %21 = sbr.rel (!%p2697_p10) target bundleno = 17 (0x11), region = 109 }
 0x20c   : > { %s2807_s24 = smov %s2797_s11 }
 0x20f   :  { %1352 = vsyncpa [#allocation4], 1 }
 0x210   :  { %1354 = vsyncpa [#allocation4 + $0x1], 1 }
 0x211   :  { %1355 = vsyncpa [#allocation7], 1 }
 0x212   :  { %1357 = vsyncpa [#allocation7 + $0x1], 1 }
 0x213   :  { %1358 = vsyncpa [#allocation5], 1 }
 0x214   :  { %1360 = vsyncpa [#allocation5 + $0x1], 1 }

</bundles_post_ra>
